<compile_context>
chip_gen: v7x
topology: tpu7x:2x2x1
jax: 0.10.0
libtpu: 0.0.40
codegen_flags: <defaults>
</compile_context>

<pallas_src>
import jax
import jax.numpy as jnp
from jax.experimental import pallas as pl
from jax.experimental.pallas import tpu as pltpu


def _copy_kernel(x_ref, o_ref):
    # Identity copy of the current lane/sublane-dense block.
    o_ref[...] = x_ref[...]


# Lane widths to try, widest first (all multiples of 128 -> unmasked vst).
_LANE_WIDTHS = (4096, 2048, 1024, 512, 256, 128)


def _round_down(x: int, m: int) -> int:
    return (x // m) * m


def _round_up(x: int, m: int) -> int:
    return ((x + m - 1) // m) * m


def _sublane_multiple(itemsize: int) -> int:
    # f32 vreg = [8,128]; bf16 packs 2/sublane -> [16,128]; int8/fp8 -> [32,128].
    return max(8, 32 // max(1, itemsize))


def _vmem_budget():
    """(target block bytes, vmem_limit_bytes), sized per TPU generation."""
    try:
        vmem_cap = pltpu.get_tpu_info().vmem_capacity_bytes
    except Exception:
        vmem_cap = 64 << 20  # assume the smallest per-TC VMEM (v7x)
    if vmem_cap >= (100 << 20):
        # v5e / v6e: 128 MiB physical -> 8 MiB blocks, 4 live buffers = 32 MiB.
        return 8 << 20, 64 << 20
    # v7x: 64 MiB physical per TC -> 6 MiB blocks (24 MiB live) + headroom.
    return 6 << 20, 44 << 20


def _pick_rows_tile(rows: int, width: int, itemsize: int, block_bytes: int) -> int:
    """Sublane (row) tile: as large as the block budget allows, dtype-aligned."""
    sub = _sublane_multiple(itemsize)
    cap = max(sub, _round_down(block_bytes // (width * itemsize), sub))
    if rows <= cap:
        # Whole sublane extent fits in one block.  Split once (sublane-aligned)
        # when large enough so v7x's two TensorCores both get a share.
        if rows >= 2 * sub:
            return max(sub, _round_down(pl.cdiv(rows, 2), sub))
        return rows  # block dim equal to the full array dim: legal, unmasked
    return cap


def _flatten_copy_2d(x2d: jax.Array, rows_tile: int, cols_tile: int,
                     vmem_limit: int) -> jax.Array:
    rows, cols = x2d.shape
    itemsize = jnp.dtype(x2d.dtype).itemsize
    grid = (pl.cdiv(rows, rows_tile), pl.cdiv(cols, cols_tile))
    return pl.pallas_call(
        _copy_kernel,
        out_shape=jax.ShapeDtypeStruct((rows, cols), x2d.dtype),
        grid_spec=pltpu.PrefetchScalarGridSpec(
            num_scalar_prefetch=0,
            grid=grid,
            in_specs=[pl.BlockSpec((rows_tile, cols_tile), lambda i, j: (i, j))],
            out_specs=pl.BlockSpec((rows_tile, cols_tile), lambda i, j: (i, j)),
        ),
        compiler_params=pltpu.CompilerParams(
            # Independent blocks -> megacore split across both v7x TCs.
            dimension_semantics=("parallel", "parallel"),
            vmem_limit_bytes=vmem_limit,
        ),
        cost_estimate=pl.CostEstimate(
            flops=0,
            transcendentals=0,
            bytes_accessed=2 * rows * cols * itemsize,
        ),
    )(x2d)


def flatten(x: jax.Array, *, materialize: bool = False) -> jax.Array:
    """Equivalent of torch `x.view(x.size(0), -1)`.

    Default (materialize=False): metadata-only reshape — zero HBM traffic,
    exactly matching torch .view semantics (which also does not copy).

    materialize=True: always produce a freshly written HBM buffer via a
    lane-dense Pallas copy kernel (no silent fallback to a reshape).
    """
    b = x.shape[0]
    f = 1
    for d in x.shape[1:]:
        f *= d
    total = b * f

    if not materialize or total == 0:
        return x.reshape(b, f)

    itemsize = jnp.dtype(x.dtype).itemsize
    block_bytes, vmem_limit = _vmem_budget()

    # Primary path: re-view the flat element stream as a lane-exact
    # (rows, width) slab (width a multiple of 128 dividing `total`) so every
    # vector load/store is full and unmasked.  Both reshapes are metadata-only
    # on row-major data, so element order matches torch .view(B, -1) exactly.
    for width in _LANE_WIDTHS:
        if total % width == 0:
            rows = total // width
            rows_tile = _pick_rows_tile(rows, width, itemsize, block_bytes)
            flat = x.reshape(rows, width)
            out = _flatten_copy_2d(flat, rows_tile, width, vmem_limit)
            return out.reshape(b, f)

    # Fallback (element count not a multiple of 128): copy the (B, F) view
    # directly with a cdiv grid.  Only edge blocks pay masked loads/stores,
    # and the materialize contract (fresh HBM buffer) always holds.
    sub = _sublane_multiple(itemsize)
    cols_tile = min(_round_up(f, 128),
                    max(128, _round_down(block_bytes // (sub * itemsize), 128)))
    rows_tile = _pick_rows_tile(b, cols_tile, itemsize, block_bytes)
    return _flatten_copy_2d(x.reshape(b, f), rows_tile, cols_tile, vmem_limit)


if __name__ == "__main__":
    key = jax.random.PRNGKey(0)
    # Small NCHW input consistent with a conv-style feature map: B=2, C=4, H=W=16.
    x = jax.random.normal(key, (2, 4, 16, 16), dtype=jnp.float32)
    ref = x.reshape(x.shape[0], -1)

    # Pallas copy path (lane-exact primary tiling: 2048 elements / row).
    y = jax.block_until_ready(flatten(x, materialize=True))
    assert y.shape == (2, 4 * 16 * 16), y.shape
    assert y.dtype == x.dtype
    assert jnp.array_equal(y, ref)

    # Pallas copy path, fallback tiling (F=105 not a multiple of 128).
    x2 = jax.random.normal(jax.random.PRNGKey(1), (2, 3, 5, 7), dtype=jnp.float32)
    y2 = jax.block_until_ready(flatten(x2, materialize=True))
    assert y2.shape == (2, 3 * 5 * 7), y2.shape
    assert jnp.array_equal(y2, x2.reshape(2, -1))

    # Default (zero-cost, torch-.view-equivalent) path must also match.
    y0 = jax.block_until_ready(flatten(x))
    assert jnp.array_equal(y0, ref)

    print("KERNEL_OK")
</pallas_src>

<mosaic_0001>
module attributes {stable_mosaic.version = 11 : i64} {
  func.func @_copy_kernel(%arg0: i32, %arg1: i32, %arg2: memref<1x2048xf32, #tpu.memory_space<vmem>>, %arg3: memref<1x2048xf32, #tpu.memory_space<vmem>>) attributes {dimension_semantics = [#tpu.dimension_semantics<parallel>, #tpu.dimension_semantics<parallel>], iteration_bounds = array<i64: 1, 1>, scalar_prefetch = 0 : i64, scratch_operands = 0 : i64, tpu.core_type = #tpu.core_type<tc>, window_params = [{transform_indices = @transform_0, window_bounds = array<i64: 1, 2048>}, {transform_indices = @transform_1, window_bounds = array<i64: 1, 2048>}]} {
    %c0 = arith.constant 0 : index
    %c0_0 = arith.constant 0 : index
    %0 = vector.load %arg2[%c0, %c0_0] : memref<1x2048xf32, #tpu.memory_space<vmem>>, vector<1x2048xf32>
    %c0_1 = arith.constant 0 : index
    %c0_2 = arith.constant 0 : index
    %1 = vector.load %arg3[%c0_1, %c0_2] : memref<1x2048xf32, #tpu.memory_space<vmem>>, vector<1x2048xf32>
    tpu.vector_store %arg3[%c0_1, %c0_2], %0 {strides = array<i32>} : memref<1x2048xf32, #tpu.memory_space<vmem>>, vector<1x2048xf32>,
    return
  }
  func.func @transform_0(%arg0: i32, %arg1: i32) -> (i32, i32) {
    %c0_i32 = arith.constant 0 : i32
    return %arg0, %arg1 : i32, i32
  }
  func.func @transform_1(%arg0: i32, %arg1: i32) -> (i32, i32) {
    %c0_i32 = arith.constant 0 : i32
    return %arg0, %arg1 : i32, i32
  }
}

</mosaic_0001>

<bundles_post_ra>
// kernel: tpu_custom_call.1
= control target key start
LH: loop header
LB: loop body
LE: loop exit
PB: predicated region body
PF: predicated region fallthrough
CT: control target
= control target key end

     0   :  { %6 = vsyncpa [#allocation3], 0  ;;  %s126_s0 = inlined_call_operand.hbm [shape: f32[1,2048], index: 0, kind: input, shape index: {}]   ;;  %s127_s1 = inlined_call_operand.hbm [shape: f32[1,2048], index: 1, kind: output, shape index: {}]  }
   0x1   :  { %7 = vsyncpa [#allocation4], 0  ;;  %s90_s6 = smov [#allocation2]   ;;  %s42_s10 = scalar_lea.hbm %s126_s0, 256 }
   0x2   :  { %s14_s7 = sshll.u32 %s90_s6, 4  ;;  %p43_p0 = scmp.ne.s32.totalorder %s126_s0, %s42_s10  ;;  %s15_s7 = int_to_ptr.vmem [resolvable:$true] %s14_s7 }
   0x3   :  { %p46_p1 = scmp.lt.u32.totalorder %s42_s10, %s126_s0 }
   0x5   :  { %p48_p2 = pnand %p46_p1, %p43_p0 }
   0x7   :  { %51 = shalt.err (!%p48_p2)
}
   0x8   :  { %s52_s15 = scalar_lea.vmem %s15_s7, 256  ;;  %p57_p4 = scmp.lt.s32.totalorder %s15_s7, %s15_s7 }
   0x9   :  { %p53_p3 = scmp.ne.s32.totalorder %s15_s7, %s52_s15  ;;  %p58_p5 = scmp.lt.s32.totalorder %s52_s15, %s52_s15 }
   0xb   :  { %p59_p6 = por %p58_p5, %p57_p4 }
   0xd   :  { %p60_p7 = pnand %p59_p6, %p53_p3 }
   0xf   :  { %63 = shalt.err (!%p60_p7)
}
  0x10   :  { %17 = dma.hbm_to_vmem [thread:$0]  %s126_s0, 256, %s15_s7, [#allocation3]  }
  0x11   :  { %86 = dma.done.wait [#allocation3], 256  }
  0x12   :  { %87 = vsyncadd [#allocation3], 4294967040  ;;  %s91_s18 = smov [#allocation5]   ;;  %v21_v0 = vld [vmem:[#allocation2] sm:$0xff]  ;;  %v22_v1 = vld [vmem:[#allocation2 + $0x8] sm:$0xff] }
  0x13   :  { %s31_s19 = sshll.u32 %s91_s18, 4  ;;  %23 = vst [vmem:[#allocation5] sm:$0xff] %v21_v0  ;;  %24 = vst [vmem:[#allocation5 + $0x8] sm:$0xff] %v22_v1  ;;  %s32_s19 = int_to_ptr.vmem [resolvable:$true] %s31_s19 }
  0x14   :  { %s64_s20 = scalar_lea.vmem %s32_s19, 256  ;;  %p69_p9 = scmp.lt.s32.totalorder %s32_s19, %s32_s19 }
  0x15   :  { %p65_p8 = scmp.ne.s32.totalorder %s32_s19, %s64_s20  ;;  %p70_p10 = scmp.lt.s32.totalorder %s64_s20, %s64_s20 }
  0x17   :  { %p71_p11 = por %p70_p10, %p69_p9 }
  0x19   :  { %p72_p12 = pnand %p71_p11, %p65_p8 }
  0x1b   :  { %75 = shalt.err (!%p72_p12)
}
  0x1c   :  { %s76_s0 = scalar_lea.hbm %s127_s1, 256 }
  0x1d   :  { %p77_p13 = scmp.ne.s32.totalorder %s127_s1, %s76_s0  ;;  %p80_p0 = scmp.lt.u32.totalorder %s76_s0, %s127_s1 }
  0x1f   :  { %p82_p1 = pnand %p80_p0, %p77_p13 }
  0x21   :  { %85 = shalt.err (!%p82_p1)
}
  0x22   :  { %34 = dma.vmem_to_hbm [thread:$0]  %s32_s19, 256, %s127_s1, [#allocation4]  }
  0x23   :  { %88 = dma.done.wait [#allocation4], 256  }
  0x24   :  { %89 = vsyncadd [#allocation4], 4294967040 }
  0x25   :  { %38 = vsyncpa [#allocation3], 1 }
  0x26   :  { %39 = vsyncpa [#allocation4], 1 }

</bundles_post_ra>
